<compile_context>
chip_gen: v5e
topology: v5e:2x2
jax: 0.10.0
libtpu: 0.0.40
codegen_flags: <defaults>
</compile_context>

<pallas_src>
import numpy as np
import jax
import jax.numpy as jnp
from jax.experimental import pallas as pl
from jax.experimental.pallas import tpu as pltpu

# ------------------------- small, module-consistent sizes -------------------
VOCAB = 32          # len(ws)        (original: vocab size of ws)
EMBED = 32          # embedding_size (original: 256)
FEAT = 32           # feature_size   (original: 100)
MAX_LEN = 16        # max_len        (original: 260)
WINDOWS = (3, 4, 5)
NUM_CLASSES = 2
PAD_IDX = 0         # ws.PAD

HMAX = max(WINDOWS)
FP = 128                          # single lane-dense 128-wide packed feature group
CONST_LANE = len(WINDOWS) * FEAT  # lane 96: constant-1 feature (folds the fc bias)
BT_CAP = 32                       # batch-tile cap (VMEM headroom at real sizes)


def textcnn_kernel(tok_ref,        # (bt, L+HMAX-1) int32 tokens (seq pre-padded)
                   wconv_ref,      # (HMAX*V, 128) bf16  folded emb@conv, 3 windows packed
                   maskbias_ref,   # (L, 128) f32  conv-bias / -inf validity / const-1 lane
                   wfc_ref,        # (128, 128) bf16  packed fc weight (+ bias row)
                   out_ref):       # (bt, 128) f32  logits in lanes 0..1
    bt, lp = tok_ref.shape
    L = lp - (HMAX - 1)
    K, fp = wconv_ref.shape
    V = K // HMAX

    # One-hot over all L+HMAX-1 token slots (out-of-range slots are PAD and
    # only feed positions that are masked before the max-pool).
    tokp = tok_ref[...]                                              # (bt, lp)
    vocab_ids = jax.lax.broadcasted_iota(jnp.int32, (bt, lp, V), 2)
    onehot = (tokp[:, :, None] == vocab_ids).astype(jnp.bfloat16)    # (bt, lp, V)

    # Single HMAX-tap im2col: one lane-concat, one K=HMAX*V matmul on the MXU.
    patches = jnp.concatenate([onehot[:, t:t + L, :] for t in range(HMAX)],
                              axis=-1)                               # (bt, L, HMAX*V)
    conv = jnp.dot(patches.reshape(bt * L, K), wconv_ref[...],
                   preferred_element_type=jnp.float32)               # (bt*L, 128)

    # maskbias: per-lane-group conv bias at valid positions, -inf at invalid
    # positions (so they never win the max), 1.0 on the constant lane, 0 on
    # padded lanes.  Bias-before-max == bias-after-max (position independent).
    conv = conv.reshape(bt, L, fp) + maskbias_ref[...]               # bcast (L,128)
    feats = jnp.maximum(jnp.max(conv, axis=1), 0.0)                  # (bt, 128) f32

    # FC: fc bias folded into wfc via the constant-1 lane.
    out_ref[...] = jnp.dot(feats.astype(jnp.bfloat16), wfc_ref[...],
                           preferred_element_type=jnp.float32)       # (bt, 128)


def textcnn_forward(tokens, params):
    """tokens: int32 (B, L). Returns logits (B, NUM_CLASSES)."""
    B, L = tokens.shape
    assert L >= HMAX, "max_len must be >= largest conv window"

    # ---- fold the embedding into the conv weights; pack all windows into one
    # 128-lane group; build the (L, 128) mask+bias constant. ----
    # TODO(synk): at a real-size vocabulary, replace the one-hot/folded-weight
    # path with an embedding-row gather (scalar-prefetch token ids + DMA from
    # an HBM-resident table) and fall back to an im2col conv on the gathered rows.
    emb = params['embedding']                                        # (V, E) f32
    wconv = jnp.zeros((HMAX, VOCAB, FP), jnp.float32)
    maskbias = jnp.zeros((L, FP), jnp.float32)
    pos = jnp.arange(L)[:, None]                                     # (L, 1)
    for wi, h in enumerate(WINDOWS):
        folded = jnp.einsum('ve,tef->tvf', emb, params[f'w{h}'])     # (h, V, F)
        wconv = wconv.at[:h, :, wi * FEAT:(wi + 1) * FEAT].set(folded)
        col = jnp.where(pos < (L - h + 1), params[f'b{h}'], -jnp.inf)   # (L, F)
        maskbias = maskbias.at[:, wi * FEAT:(wi + 1) * FEAT].set(col)
    maskbias = maskbias.at[:, CONST_LANE].set(1.0)                   # constant-1 lane
    wconv = wconv.reshape(HMAX * VOCAB, FP).astype(jnp.bfloat16)     # (160, 128)

    # Packed fc weight: rows 0..3F-1 = fc weight, row CONST_LANE = fc bias.
    wfc_pad = jnp.zeros((FP, FP), jnp.float32)
    wfc_pad = wfc_pad.at[:len(WINDOWS) * FEAT, :NUM_CLASSES].set(params['wfc'])
    wfc_pad = wfc_pad.at[CONST_LANE, :NUM_CLASSES].set(params['bfc'][0])
    wfc_pad = wfc_pad.astype(jnp.bfloat16)

    # ---- batch tiling: capped tile, always >= 2 parallel grid steps so both
    # v7x TensorCores are used. ----
    bt = min(BT_CAP, max(8, pl.cdiv(B, 16) * 8))
    Bp = pl.cdiv(B, bt) * bt
    if Bp // bt < 2:
        Bp = 2 * bt
    # Pad batch rows with PAD tokens (sliced off below) and pad the sequence
    # by HMAX-1 so no in-kernel token concat is needed.
    tok = jnp.pad(tokens.astype(jnp.int32), ((0, Bp - B), (0, HMAX - 1)),
                  constant_values=PAD_IDX)                           # (Bp, L+4)

    rep = lambda arr: pl.BlockSpec(arr.shape, lambda i: (0, 0))      # resident consts

    out = pl.pallas_call(
        textcnn_kernel,
        out_shape=jax.ShapeDtypeStruct((Bp, FP), jnp.float32),
        grid=(Bp // bt,),
        in_specs=[pl.BlockSpec((bt, L + HMAX - 1), lambda i: (i, 0)),
                  rep(wconv), rep(maskbias), rep(wfc_pad)],
        out_specs=pl.BlockSpec((bt, FP), lambda i: (i, 0)),
        compiler_params=pltpu.CompilerParams(
            dimension_semantics=("parallel",)),
        # At real sizes (E=256, L=260) also set vmem_limit_bytes per-generation
        # (e.g. ~64 MiB on v6e) and keep bt <= 16 on v7x / <= 8 on v5e.
    )(tok, wconv, maskbias, wfc_pad)

    return out[:B, :NUM_CLASSES]


def make_params(key):
    ks = jax.random.split(key, 10)
    emb = jax.random.normal(ks[0], (VOCAB, EMBED), jnp.float32) * 0.1
    emb = emb.at[PAD_IDX].set(0.0)                                   # padding_idx row
    params = {'embedding': emb}
    for i, h in enumerate(WINDOWS):
        # stored as (h, E, F); equivalent to PyTorch Conv1d weight (F, E, h).
        params[f'w{h}'] = jax.random.normal(ks[1 + 2 * i], (h, EMBED, FEAT),
                                            jnp.float32) * 0.05
        params[f'b{h}'] = jax.random.normal(ks[2 + 2 * i], (1, FEAT),
                                            jnp.float32) * 0.05
    params['wfc'] = jax.random.normal(ks[7], (FEAT * len(WINDOWS), NUM_CLASSES),
                                      jnp.float32) * 0.05
    params['bfc'] = jax.random.normal(ks[8], (1, NUM_CLASSES), jnp.float32) * 0.05
    return params


def reference_forward(tokens, params):
    """Pure-JAX f32 reference of the PyTorch math (sanity check)."""
    x = jnp.take(params['embedding'], tokens, axis=0)                # (B, L, E)
    L = x.shape[1]
    feats = []
    for h in WINDOWS:
        w, b = params[f'w{h}'], params[f'b{h}']
        l_out = L - h + 1
        acc = jnp.zeros((x.shape[0], l_out, FEAT), jnp.float32)
        for t in range(h):
            acc = acc + jnp.einsum('ble,ef->blf', x[:, t:t + l_out, :], w[t])
        acc = jnp.maximum(acc + b[None, :, :], 0.0)
        feats.append(jnp.max(acc, axis=1))
    feats = jnp.concatenate(feats, axis=-1)
    return feats @ params['wfc'] + params['bfc']


if __name__ == "__main__":
    key = jax.random.PRNGKey(0)
    kp, kt = jax.random.split(key)
    params = make_params(kp)

    B = 2
    tokens = jax.random.randint(kt, (B, MAX_LEN), 0, VOCAB, dtype=jnp.int32)

    fwd = jax.jit(textcnn_forward)
    logits = jax.block_until_ready(fwd(tokens, params))
    ref = jax.block_until_ready(reference_forward(tokens, params))

    if logits.shape != (B, NUM_CLASSES):
        raise SystemExit(f"bad output shape {logits.shape}")
    if not np.allclose(np.asarray(logits), np.asarray(ref), rtol=2e-2, atol=1e-2):
        raise SystemExit("mismatch vs reference")

    print("KERNEL_OK")
</pallas_src>

<mosaic_0001>
module attributes {stable_mosaic.version = 11 : i64} {
  func.func @textcnn_kernel(%arg0: i32, %arg1: memref<8x20xi32, #tpu.memory_space<vmem>>, %arg2: memref<160x128xbf16, #tpu.memory_space<vmem>>, %arg3: memref<16x128xf32, #tpu.memory_space<vmem>>, %arg4: memref<128x128xbf16, #tpu.memory_space<vmem>>, %arg5: memref<8x128xf32, #tpu.memory_space<vmem>>) attributes {dimension_semantics = [#tpu.dimension_semantics<parallel>], iteration_bounds = array<i64: 2>, scalar_prefetch = 0 : i64, scratch_operands = 0 : i64, tpu.core_type = #tpu.core_type<tc>, window_params = [{transform_indices = @transform_0, window_bounds = array<i64: 8, 20>}, {pipeline_mode = #tpu.pipeline_mode<synchronous>, transform_indices = @transform_1, window_bounds = array<i64: 160, 128>}, {pipeline_mode = #tpu.pipeline_mode<synchronous>, transform_indices = @transform_2, window_bounds = array<i64: 16, 128>}, {pipeline_mode = #tpu.pipeline_mode<synchronous>, transform_indices = @transform_3, window_bounds = array<i64: 128, 128>}, {transform_indices = @transform_4, window_bounds = array<i64: 8, 128>}]} {
    %c0 = arith.constant 0 : index
    %c0_0 = arith.constant 0 : index
    %0 = vector.load %arg1[%c0, %c0_0] : memref<8x20xi32, #tpu.memory_space<vmem>>, vector<8x20xi32>
    %1 = tpu.iota {dimensions = array<i32: 2>} : vector<8x20x32xi32>
    %2 = vector.shape_cast %0 : vector<8x20xi32> to vector<8x20x1xi32>
    %3 = vector.broadcast %2 : vector<8x20x1xi32> to vector<8x20x32xi32>
    %4 = arith.cmpi eq, %3, %1 : vector<8x20x32xi32>
    %5 = arith.extui %4 : vector<8x20x32xi1> to vector<8x20x32xi32>
    %6 = arith.sitofp %5 : vector<8x20x32xi32> to vector<8x20x32xf32>
    %7 = arith.truncf %6 : vector<8x20x32xf32> to vector<8x20x32xbf16>
    %8 = vector.extract_strided_slice %7 {offsets = [0, 0, 0], sizes = [8, 16, 32], strides = [1, 1, 1]} : vector<8x20x32xbf16> to vector<8x16x32xbf16>
    %9 = vector.extract_strided_slice %7 {offsets = [0, 1, 0], sizes = [8, 16, 32], strides = [1, 1, 1]} : vector<8x20x32xbf16> to vector<8x16x32xbf16>
    %10 = vector.extract_strided_slice %7 {offsets = [0, 2, 0], sizes = [8, 16, 32], strides = [1, 1, 1]} : vector<8x20x32xbf16> to vector<8x16x32xbf16>
    %11 = vector.extract_strided_slice %7 {offsets = [0, 3, 0], sizes = [8, 16, 32], strides = [1, 1, 1]} : vector<8x20x32xbf16> to vector<8x16x32xbf16>
    %12 = vector.extract_strided_slice %7 {offsets = [0, 4, 0], sizes = [8, 16, 32], strides = [1, 1, 1]} : vector<8x20x32xbf16> to vector<8x16x32xbf16>
    %13 = tpu.concatenate %8, %9, %10, %11, %12 in 2 : vector<8x16x32xbf16>, vector<8x16x32xbf16>, vector<8x16x32xbf16>, vector<8x16x32xbf16>, vector<8x16x32xbf16> -> vector<8x16x160xbf16>
    %14 = vector.shape_cast %13 : vector<8x16x160xbf16> to vector<128x160xbf16>
    %c0_1 = arith.constant 0 : index
    %c0_2 = arith.constant 0 : index
    %15 = vector.load %arg2[%c0_1, %c0_2] : memref<160x128xbf16, #tpu.memory_space<vmem>>, vector<160x128xbf16>
    %cst = arith.constant dense<0.000000e+00> : vector<128x128xf32>
    %16 = tpu.matmul %14, %15, %cst {dimension_numbers = #tpu.dot_dimension_numbers<[1], [0], [0], [1], [0, 0, 1, 1], [], []>} : vector<128x160xbf16>, vector<160x128xbf16>, vector<128x128xf32> -> vector<128x128xf32>
    %17 = vector.shape_cast %16 : vector<128x128xf32> to vector<8x16x128xf32>
    %c0_3 = arith.constant 0 : index
    %c0_4 = arith.constant 0 : index
    %18 = vector.load %arg3[%c0_3, %c0_4] : memref<16x128xf32, #tpu.memory_space<vmem>>, vector<16x128xf32>
    %19 = vector.shape_cast %18 : vector<16x128xf32> to vector<1x16x128xf32>
    %20 = vector.broadcast %19 : vector<1x16x128xf32> to vector<8x16x128xf32>
    %21 = arith.addf %17, %20 : vector<8x16x128xf32>
    %cst_5 = arith.constant dense<0xFF800000> : vector<8x128xf32>
    %22 = vector.multi_reduction <maximumf>, %21, %cst_5 [1] : vector<8x16x128xf32> to vector<8x128xf32>
    %cst_6 = arith.constant 0.000000e+00 : f32
    %23 = vector.broadcast %cst_6 : f32 to vector<8x128xf32>
    %24 = arith.maximumf %22, %23 : vector<8x128xf32>
    %25 = arith.truncf %24 : vector<8x128xf32> to vector<8x128xbf16>
    %c0_7 = arith.constant 0 : index
    %c0_8 = arith.constant 0 : index
    %26 = vector.load %arg4[%c0_7, %c0_8] : memref<128x128xbf16, #tpu.memory_space<vmem>>, vector<128x128xbf16>
    %cst_9 = arith.constant dense<0.000000e+00> : vector<8x128xf32>
    %27 = tpu.matmul %25, %26, %cst_9 {dimension_numbers = #tpu.dot_dimension_numbers<[1], [0], [0], [1], [0, 0, 1, 1], [], []>} : vector<8x128xbf16>, vector<128x128xbf16>, vector<8x128xf32> -> vector<8x128xf32>
    %c0_10 = arith.constant 0 : index
    %c0_11 = arith.constant 0 : index
    %28 = vector.load %arg5[%c0_10, %c0_11] : memref<8x128xf32, #tpu.memory_space<vmem>>, vector<8x128xf32>
    tpu.vector_store %arg5[%c0_10, %c0_11], %27 {strides = array<i32>} : memref<8x128xf32, #tpu.memory_space<vmem>>, vector<8x128xf32>,
    return
  }
  func.func @transform_0(%arg0: i32) -> (i32, i32) {
    %c0_i32 = arith.constant 0 : i32
    %c0_i32_0 = arith.constant 0 : i32
    return %arg0, %c0_i32 : i32, i32
  }
  func.func @transform_1(%arg0: i32) -> (i32, i32) {
    %c0_i32 = arith.constant 0 : i32
    %c0_i32_0 = arith.constant 0 : i32
    %c0_i32_1 = arith.constant 0 : i32
    return %c0_i32, %c0_i32_0 : i32, i32
  }
  func.func @transform_2(%arg0: i32) -> (i32, i32) {
    %c0_i32 = arith.constant 0 : i32
    %c0_i32_0 = arith.constant 0 : i32
    %c0_i32_1 = arith.constant 0 : i32
    return %c0_i32, %c0_i32_0 : i32, i32
  }
  func.func @transform_3(%arg0: i32) -> (i32, i32) {
    %c0_i32 = arith.constant 0 : i32
    %c0_i32_0 = arith.constant 0 : i32
    %c0_i32_1 = arith.constant 0 : i32
    return %c0_i32, %c0_i32_0 : i32, i32
  }
  func.func @transform_4(%arg0: i32) -> (i32, i32) {
    %c0_i32 = arith.constant 0 : i32
    %c0_i32_0 = arith.constant 0 : i32
    return %arg0, %c0_i32 : i32, i32
  }
}

</mosaic_0001>

<bundles_post_ra>
// kernel: textcnn_forward.1
= control target key start
LH: loop header
LB: loop body
LE: loop exit
PB: predicated region body
PF: predicated region fallthrough
CT: control target
= control target key end

     0   :  { %s1501_s15 = smov 0   ;;  %s1833_s0 = inlined_call_operand.vmem [shape: s32[16,20], index: 0, kind: input, shape index: {}]   ;;  %s1834_s1 = inlined_call_operand.vmem [shape: bf16[160,128], index: 1, kind: input, shape index: {}]   ;;  %s1835_s2 = inlined_call_operand.vmem [shape: f32[16,128], index: 2, kind: input, shape index: {}]   ;;  %s1836_s3 = inlined_call_operand.vmem [shape: bf16[128,128], index: 3, kind: input, shape index: {}]   ;;  %s1837_s4 = inlined_call_operand.vmem [shape: f32[16,128], index: 4, kind: output, shape index: {}]  }
   0x1 LB: > { %s1291_s16 = sadd.s32 4294967295, %s1470_s15   ;;  %p1295_p0 = scmp.ge.s32.totalorder %s1470_s15, 1  ;;  %s1470_s15 = sphi %s1501_s15, %s14_s15  }
   0x2   : > { %p161_p1 = scmp.lt.s32.totalorder %s1470_s15, 3 }
   0x4   : > { %p162_p2 = pnand %p1295_p0, %p161_p1 }
   0x5   : > { %p185_p3 = scmp.lt.s32.totalorder (!%p162_p2), %s1291_s16, 1  ;;  %s1473_s25 = smov (!%p162_p2), 64  }
   0x6   : > { %165 = sbr.rel (%p162_p2) target bundleno = 702 (0x2be), region = 36  ;;  %s1474_s26 = smov (!%p162_p2), 32  }
   0x7   : > { %s1475_s27 = smov (!%p162_p2), 96  }
   0xb   : > { %v195_v0 = vlaneseq  ;;  %s1839_s16 = smov (!%p185_p3, %s1291_s16), 1  ;;  %v1413_v13 = vld [vmem:[%s1834_s1 + $0x48] sm:$0xff]  ;;  %v1412_v15 = vld [vmem:[%s1834_s1 + $0x40] sm:$0xff]  ;;  %v1472_v19 = vmov 0.0   ;;  %vm622_vm7 = vcmask 1046528   ;;  %vm752_vm8 = vcmask 1045504  }
   0xc   : > { %s1296_s17 = sshll.u32 %s1839_s16, 3  ;;  %995 = vmatpush.bf16.msra.mxu1 %v1413_v13  ;;  %1430 = vmatpush.bf16.msra.mxu2 %v1413_v13  ;;  %vm777_vm9 = vcmask 261120   ;;  %vm509_vm11 = vsmask.f32 7424  ;;  %vm663_vm12 = vsmask.f32 6400 }
   0xd   : > { %v199_v1 = vshrl.u32 %v195_v0, 7  ;;  %s188_s20 = scalar_lea.vmem %s1833_s0, %s1296_s17  ;;  %v1525_v17 = vand.u32 127, %v195_v0 }
   0xe   : > { %v194_v3 = vld [vmem:[%s188_s20] sm:$0xff]  ;;  %s192_s20 = scalar_lea.vmem %s1837_s4, %s1296_s17 }
   0xf   : > { %1446 = vset.pattern.permute.xlu1 %v199_v1  ;;  %1444 = vset.pattern.permute.xlu0 %v199_v1  ;;  %v212_v2 = vadd.s32 16, %v199_v1  ;;  %v273_v4 = vperm.slane %v194_v3, 4  ;;  %v197_v5 = vperm.slane %v194_v3, 0  ;;  %v206_v6 = vadd.s32 8, %v199_v1 }
  0x10   : > { %v311_v7 = vperm.slane %v194_v3, 6  ;;  %v292_v8 = vperm.slane %v194_v3, 5  ;;  %v216_v9 = vperm.slane %v194_v3, 1  ;;  %v330_v10 = vperm.slane %v194_v3, 7  ;;  %996 = vmatpush.bf16.msra.mxu1 %v1412_v15  ;;  %1431 = vmatpush.bf16.msra.mxu2 %v1412_v15 }
  0x11   : > { %1449 = vset.pattern.permute.xlu2 %v212_v2  ;;  %v235_v11 = vperm.slane %v194_v3, 2  ;;  %v254_v12 = vperm.slane %v194_v3, 3 }
  0x17   : > { %278 = vperm.xlu0 %1444, %v273_v4   ;;  %202 = vperm.xlu1 %1446, %v197_v5  }
  0x19   : > { %290 = vperm.xlu2 %1449, %v273_v4  }
  0x1f   : > { %1445 = vset.pattern.permute.xlu0 %v206_v6  ;;  %1447 = vset.pattern.permute.xlu1 %v206_v6 }
  0x21   : > { %214 = vperm.xlu2 %1449, %v197_v5  }
  0x27   : > { %284 = vperm.xlu0 %1445, %v273_v4   ;;  %208 = vperm.xlu1 %1447, %v197_v5  }
  0x29   : > { %1450 = vset.pattern.permute.xlu2 %v206_v6 }
  0x2f   : > { %1448 = vset.pattern.permute.xlu1 %v199_v1  ;;  %322 = vperm.xlu0 %1445, %v311_v7  }
  0x31   : > { %303 = vperm.xlu2 %1450, %v292_v8  }
  0x37   : > { %297 = vperm.xlu1 %1448, %v292_v8   ;;  %1455 = vset.pattern.permute.xlu0 %v199_v1 }
  0x39   : > { %1452 = vset.pattern.permute.xlu2 %v212_v2 }
  0x3f   : > { %1451 = vset.pattern.permute.xlu1 %v206_v6  ;;  %221 = vperm.xlu0 %1455, %v216_v9  }
  0x41   : > { %309 = vperm.xlu2 %1452, %v292_v8  }
  0x47   : > { %227 = vperm.xlu1 %1451, %v216_v9   ;;  %335 = vperm.xlu0 %1455, %v330_v10  }
  0x49   : > { %1454 = vset.pattern.permute.xlu2 %v199_v1 }
  0x4f   : > { %1453 = vset.pattern.permute.xlu1 %v212_v2  ;;  %1463 = vset.pattern.permute.xlu0 %v212_v2 }
  0x51   : > { %316 = vperm.xlu2 %1454, %v311_v7  }
  0x57   : > { %233 = vperm.xlu1 %1453, %v216_v9   ;;  %271 = vperm.xlu0 %1463, %v254_v12  }
  0x59   : > { %1457 = vset.pattern.permute.xlu2 %v206_v6 }
  0x5f   : > { %1456 = vset.pattern.permute.xlu1 %v199_v1 }
  0x61   : > { %246 = vperm.xlu2 %1457, %v235_v11  }
  0x67   : > { %240 = vperm.xlu1 %1456, %v235_v11  }
  0x69   : > { %1459 = vset.pattern.permute.xlu2 %v212_v2 }
  0x6f   : > { %1458 = vset.pattern.permute.xlu1 %v212_v2 }
  0x71   : > { %252 = vperm.xlu2 %1459, %v235_v11  }
  0x73   : > { %v291_v14 = vpop.permute.xlu2 %290 }
  0x74   : > { %vm363_vm0 = vcmp.eq.s32.totalorder %v291_v14, %v1525_v17 }
  0x75   : > { %v1312_v20 = vsel %vm363_vm0, 1.0, %v1472_v19 }
  0x76   : > { %v435_v24 = vpack.c.bf16 %v1312_v20, %v1312_v20 }
  0x77   : > { %328 = vperm.xlu1 %1458, %v311_v7  }
  0x78   : > { %v497_v27 = vunpack.c.l.b16 %v435_v24 }
  0x79   : > { %1461 = vset.pattern.permute.xlu2 %v199_v1 }
  0x7a   : > { %v1537_v34 = vpack.c.b16 %v497_v27, %v497_v27 }
  0x7b   : > { %v215_v16 = vpop.permute.xlu2 %214 }
  0x7c   : > { %vm351_vm1 = vcmp.eq.s32.totalorder %v215_v16, %v1525_v17  ;;  %v636_v45 = vrot.slane %v1537_v34, 1  ;;  %v566_v46 = vshll.u32 %v1537_v34, 16  ;;  %v703_v50 = vshrl.u32 %v1537_v34, 16 }
  0x7d   : > { %v1300_v23 = vsel %vm351_vm1, 1.0, %v1472_v19 }
  0x7e   : > { %v423_v25 = vpack.c.bf16 %v1300_v23, %v1300_v23  ;;  %v705_v1 = vrot.slane %v703_v50, 1  ;;  %v568_v7 = vrot.slane %v566_v46, 1 }
  0x7f   : > { %1460 = vset.pattern.permute.xlu1 %v206_v6 }
  0x80   : > { %v493_v30 = vunpack.c.l.b16 %v423_v25 }
  0x81   : > { %259 = vperm.xlu2 %1461, %v254_v12  }
  0x82   : > { %v1541_v41 = vpack.c.b16 %v493_v30, %v493_v30 }
  0x84   : > { %v754_v51 = vrot.slane %v1541_v41, 2  ;;  %v624_v55 = vrot.slane %v1541_v41, 1 }
  0x87   : > { %341 = vperm.xlu1 %1460, %v330_v10  }
  0x89   : > { %1462 = vset.pattern.permute.xlu2 %v212_v2  ;;  %v279_v18 = vpop.permute.xlu0 %278  ;;  %v203_v21 = vpop.permute.xlu1 %202  ;;  %v706_v2 = vrot.slane %v566_v46, 2 }
  0x8a   : > { %vm361_vm2 = vcmp.eq.s32.totalorder %v279_v18, %v1525_v17  ;;  %vm349_vm3 = vcmp.eq.s32.totalorder %v203_v21, %v1525_v17  ;;  %v518_v18 = vshll.u32 %v1541_v41, 16 }
  0x8b   : > { %v304_v22 = vpop.permute.xlu2 %303  ;;  %v1310_v26 = vsel %vm361_vm2, 1.0, %v1472_v19  ;;  %v1298_v28 = vsel %vm349_vm3, 1.0, %v1472_v19  ;;  %v707_v13 = vor.u32 %v706_v2, %v705_v1 }
  0x8c   : > { %v433_v29 = vpack.c.bf16 %v1310_v26, %v1310_v26  ;;  %v421_v33 = vpack.c.bf16 %v1298_v28, %v1298_v28  ;;  %vm365_vm10 = vcmp.eq.s32.totalorder %v304_v22, %v1525_v17  ;;  %v667_v26 = vshrl.u32 %v1541_v41, 16 }
  0x8d   : > { %v1314_v4 = vsel %vm365_vm10, 1.0, %v1472_v19  ;;  %v520_v27 = vrot.slane %v518_v18, 1 }
  0x8e   : > { %v469_v38 = vunpack.c.l.b16 %v433_v29  ;;  %v461_v42 = vunpack.c.l.b16 %v421_v33 }
  0x8f   : > { %265 = vperm.xlu1 %1460, %v254_v12   ;;  %v437_v12 = vpack.c.bf16 %v1314_v4, %v1314_v4 }
  0x91   : > { %347 = vperm.xlu2 %1462, %v330_v10   ;;  %v472_v24 = vunpack.c.l.b16 %v437_v12 }
  0x99   : > { %v285_v31 = vpop.permute.xlu0 %284  ;;  %v209_v32 = vpop.permute.xlu1 %208 }
  0x9a   : > { %vm362_vm4 = vcmp.eq.s32.totalorder %v285_v31, %v1525_v17  ;;  %vm350_vm5 = vcmp.eq.s32.totalorder %v209_v32, %v1525_v17 }
  0x9b   : > { %v1311_v35 = vsel %vm362_vm4, 1.0, %v1472_v19  ;;  %v1299_v36 = vsel %vm350_vm5, 1.0, %v1472_v19  ;;  %v310_v37 = vpop.permute.xlu2 %309 }
  0x9c   : > { %v434_v39 = vpack.c.bf16 %v1311_v35, %v1311_v35  ;;  %v422_v40 = vpack.c.bf16 %v1299_v36, %v1299_v36  ;;  %vm366_vm6 = vcmp.eq.s32.totalorder %v310_v37, %v1525_v17  ;;  %v669_v37 = vrot.slane %v667_v26, 1 }
  0x9d   : > { %v1315_v49 = vsel %vm366_vm6, 1.0, %v1472_v19 }
  0x9e   : > { %v470_v43 = vunpack.c.l.b16 %v434_v39  ;;  %v462_v44 = vunpack.c.l.b16 %v422_v40  ;;  %v438_v56 = vpack.c.bf16 %v1315_v49, %v1315_v49 }
  0xa0   : > { %v1546_v47 = vpack.c.b16 %v470_v43, %v469_v38  ;;  %v1548_v48 = vpack.c.b16 %v462_v44, %v461_v42  ;;  %v498_v5 = vunpack.c.l.b16 %v438_v56  ;;  %v670_v38 = vrot.slane %v518_v18, 2 }
  0xa1   : > { %v1575_v22 = vpop.permute.xlu0 %322 }
  0xa2   : > { %v635_v52 = vrot.slane %v1546_v47, 1  ;;  %v753_v53 = vrot.slane %v1548_v48, 2  ;;  %v623_v54 = vrot.slane %v1548_v48, 1  ;;  %v559_v57 = vshrl.u32 %v1546_v47, 16 }
  0xa3   : > { %v561_v58 = vshll.u32 %v1546_v47, 16  ;;  %v513_v3 = vshll.u32 %v1548_v48, 16  ;;  %v506_v14 = vpack.c.b16 %v498_v5, %v498_v5  ;;  %v511_v16 = vshrl.u32 %v1548_v48, 16 }
  0xa4   : > { %v637_v59 = vsel %vm622_vm7, %v635_v52, %v636_v45  ;;  %v755_v60 = vsel %vm752_vm8, %v753_v53, %v754_v51  ;;  %v625_v61 = vsel %vm622_vm7, %v623_v54, %v624_v55  ;;  %v700_v63 = vrot.slane %v559_v57, 1 }
  0xa5   : > { %655 = vrot.lane.b32.xlu2 %v637_v59, %s1473_s25  ;;  %1362 = vmatmul.msk.bf16.vlgmr.msra.gmra.mxu1 %vm777_vm9, %v755_v60  ;;  %v563_v62 = vrot.slane %v561_v58, 1  ;;  %v701_v0 = vrot.slane %v561_v58, 2  ;;  %v515_v11 = vrot.slane %v513_v3, 1  ;;  %v769_v28 = vrot.slane %v506_v14, 2 }
  0xa6   : > { %647 = vrot.lane.b32.xlu0 %v625_v61, %s1473_s25  ;;  %v639_v30 = vrot.slane %v506_v14, 1  ;;  %v664_v31 = vrot.slane %v511_v16, 1  ;;  %v665_v32 = vrot.slane %v513_v3, 2  ;;  %v578_v40 = vshll.u32 %v506_v14, 16 }
  0xa7   : > { %v564_v6 = vor.u32 %v563_v62, %v559_v57  ;;  %v702_v8 = vor.u32 %v701_v0, %v700_v63  ;;  %v516_v23 = vor.u32 %v515_v11, %v511_v16  ;;  %v712_v44 = vshrl.u32 %v506_v14, 16 }
  0xa8   : > { %v666_v43 = vor.u32 %v665_v32, %v664_v31  ;;  %v580_v49 = vrot.slane %v578_v40, 1  ;;  %v671_v51 = vor.u32 %v670_v38, %v669_v37  ;;  %v715_v55 = vrot.slane %v578_v40, 2 }
  0xa9   : > { %v569_v9 = vsel %vm509_vm11, %v564_v6, %v568_v7  ;;  %v298_v10 = vpop.permute.xlu1 %297  ;;  %v708_v21 = vsel %vm663_vm12, %v702_v8, %v707_v13  ;;  %v521_v33 = vsel %vm509_vm11, %v516_v23, %v520_v27  ;;  %v714_v54 = vrot.slane %v712_v44, 1 }
  0xaa   : > { %614 = vrot.lane.b32.xlu1 %v569_v9, %s1474_s26  ;;  %vm364_vm13 = vcmp.eq.s32.totalorder %v298_v10, %v1525_v17  ;;  %v672_v53 = vsel %vm663_vm12, %v666_v43, %v671_v51  ;;  %vm368_vm3 = vcmp.eq.s32.totalorder %v1575_v22, %v1525_v17 }
  0xab   : > { %v1313_v15 = vsel %vm364_vm13, 1.0, %v1472_v19  ;;  %v317_v60 = vpop.permute.xlu2 %316  ;;  %v716_v0 = vor.u32 %v715_v55, %v714_v54  ;;  %v1317_v44 = vsel %vm368_vm3, 1.0, %v1472_v19  ;;  %vm1168_vm3 = vcmask 1045509  }
  0xac   : > { %v436_v20 = vpack.c.bf16 %v1313_v15, %v1313_v15  ;;  %vm367_vm4 = vcmp.eq.s32.totalorder %v317_v60, %v1525_v17  ;;  %v440_v54 = vpack.c.bf16 %v1317_v44, %v1317_v44 }
  0xad   : > { %744 = vrot.lane.b32.xlu2 %v708_v21, %s1475_s27 }
  0xae   : > { %v471_v25 = vunpack.c.l.b16 %v436_v20 }
  0xb0   : > { %v1579_v29 = vpack.c.b16 %v472_v24, %v471_v25 }
  0xb1   : > { %v222_v50 = vpop.permute.xlu0 %221 }
  0xb2   : > { %606 = vrot.lane.b32.xlu1 %v521_v33, %s1474_s26  ;;  %v768_v35 = vrot.slane %v1579_v29, 2  ;;  %v638_v36 = vrot.slane %v1579_v29, 1  ;;  %v573_v39 = vshll.u32 %v1579_v29, 16  ;;  %v571_v45 = vshrl.u32 %v1579_v29, 16 }
  0xb3   : > { %vm352_vm14 = vcmp.eq.s32.totalorder %v222_v50, %v1525_v17 }
  0xb4   : > { %v770_v41 = vsel %vm752_vm8, %v768_v35, %v769_v28  ;;  %v640_v42 = vsel %vm622_vm7, %v638_v36, %v639_v30  ;;  %v575_v46 = vrot.slane %v573_v39, 1  ;;  %v709_v58 = vrot.slane %v571_v45, 1 }
  0xb5   : > { %1367 = vmatmul.msk.bf16.vlgmr.msra.gmra.mxu2 %vm777_vm9, %v770_v41  ;;  %657 = vrot.lane.b32.xlu0 %v640_v42, %s1473_s25  ;;  %v710_v59 = vrot.slane %v573_v39, 2  ;;  %v1301_v61 = vsel %vm352_vm14, 1.0, %v1472_v19 }
  0xb6   : > { %v576_v52 = vor.u32 %v575_v46, %v571_v45  ;;  %v424_v1 = vpack.c.bf16 %v1301_v61, %v1301_v61  ;;  %v1316_v46 = vsel %vm367_vm4, 1.0, %v1472_v19  ;;  %vm1170_vm4 = vcmask 1046534  }
  0xb7   : > { %v711_v63 = vor.u32 %v710_v59, %v709_v58  ;;  %v439_v55 = vpack.c.bf16 %v1316_v46, %v1316_v46  ;;  %v1411_v58 = vld [vmem:[%s1834_s1 + $0x38] sm:$0xff] }
  0xb8   : > { %v581_v56 = vsel %vm509_vm11, %v576_v52, %v580_v49  ;;  %v463_v5 = vunpack.c.l.b16 %v424_v1  ;;  %1422 = vmatpush.bf16.msra.mxu3 %v1411_v58  ;;  %940 = vmatpush.bf16.msra.mxu0 %v1411_v58 }
  0xb9   : > { %v228_v57 = vpop.permute.xlu1 %227  ;;  %616 = vrot.lane.b32.xlu2 %v581_v56, %s1474_s26  ;;  %v717_v3 = vsel %vm663_vm12, %v711_v63, %v716_v0  ;;  %v473_v63 = vunpack.c.l.b16 %v439_v55 }
  0xba   : > { %736 = vrot.lane.b32.xlu1 %v672_v53, %s1475_s27  ;;  %vm353_vm15 = vcmp.eq.s32.totalorder %v228_v57, %v1525_v17 }
  0xbb   : > { %v1302_v62 = vsel %vm353_vm15, 1.0, %v1472_v19  ;;  %v247_v4 = vpop.permute.xlu2 %246 }
  0xbc   : > { %v425_v2 = vpack.c.bf16 %v1302_v62, %v1302_v62  ;;  %vm356_vm2 = vcmp.eq.s32.totalorder %v247_v4, %v1525_v17  ;;  %v474_v62 = vunpack.c.l.b16 %v440_v54 }
  0xbd   : > { %v1305_v37 = vsel %vm356_vm2, 1.0, %v1472_v19  ;;  %vm1166_vm2 = vcmask 1044484  }
  0xbe   : > { %v464_v6 = vunpack.c.l.b16 %v425_v2  ;;  %v428_v42 = vpack.c.bf16 %v1305_v37, %v1305_v37 }
  0xc0   : > { %v1601_v7 = vpack.c.b16 %v464_v6, %v463_v5  ;;  %v466_v51 = vunpack.c.l.b16 %v428_v42 }
  0xc1   : > { %746 = vrot.lane.b32.xlu2 %v717_v3, %s1475_s27 }
  0xc2   : > { %v525_v10 = vshll.u32 %v1601_v7, 16  ;;  %v756_v16 = vrot.slane %v1601_v7, 2  ;;  %v523_v18 = vshrl.u32 %v1601_v7, 16  ;;  %v626_v23 = vrot.slane %v1601_v7, 1 }
  0xc4   : > { %v527_v14 = vrot.slane %v525_v10, 1  ;;  %v673_v39 = vrot.slane %v523_v18, 1  ;;  %v674_v40 = vrot.slane %v525_v10, 2 }
  0xc6   : > { %v528_v26 = vor.u32 %v527_v14, %v523_v18  ;;  %v675_v22 = vor.u32 %v674_v40, %v673_v39  ;;  %v336_v18 = vpop.permute.xlu0 %335 }
  0xc7   : > { %vm370_vm13 = vcmp.eq.s32.totalorder %v336_v18, %v1525_v17 }
  0xc8   : > { %v1319_v55 = vsel %vm370_vm13, 1.0, %v1472_v19 }
  0xc9   : > { %v234_v8 = vpop.permute.xlu1 %233 }
  0xca   : > { %vm354_vm0 = vcmp.eq.s32.totalorder %v234_v8, %v1525_v17  ;;  %v1410_v8 = vld [vmem:[%s1834_s1 + $0x30] sm:$0xff] }
  0xcb   : > { %v1303_v9 = vsel %vm354_vm0, 1.0, %v1472_v19  ;;  %v253_v11 = vpop.permute.xlu2 %252  ;;  %1423 = vmatpush.bf16.msra.mxu3 %v1410_v8  ;;  %941 = vmatpush.bf16.msra.mxu0 %v1410_v8 }
  0xcc   : > { %v426_v12 = vpack.c.bf16 %v1303_v9, %v1303_v9  ;;  %vm357_vm1 = vcmp.eq.s32.totalorder %v253_v11, %v1525_v17  ;;  %v1648_v9 = vpack.c.b16 %v474_v62, %v473_v63  ;;  %v1405_v63 = vld [vmem:[%s1834_s1 + $0x8] sm:$0xff] }
  0xcd   : > { %v1306_v20 = vsel %vm357_vm1, 1.0, %v1472_v19 }
  0xce   : > { %v494_v13 = vunpack.c.l.b16 %v426_v12  ;;  %v429_v32 = vpack.c.bf16 %v1306_v20, %v1306_v20  ;;  %v641_v39 = vrot.slane %v1648_v9, 1  ;;  %v272_v42 = vpop.permute.xlu0 %271 }
  0xcf   : > { %vm360_vm14 = vcmp.eq.s32.totalorder %v272_v42, %v1525_v17 }
  0xd0   : > { %v502_v15 = vpack.c.b16 %v494_v13, %v494_v13  ;;  %v495_v38 = vunpack.c.l.b16 %v429_v32  ;;  %v1309_v62 = vsel %vm360_vm14, 1.0, %v1472_v19 }
  0xd2   : > { %v757_v21 = vrot.slane %v502_v15, 2  ;;  %v627_v24 = vrot.slane %v502_v15, 1  ;;  %v530_v25 = vshll.u32 %v502_v15, 16  ;;  %v676_v27 = vshrl.u32 %v502_v15, 16  ;;  %v1409_v15 = vld [vmem:[%s1834_s1 + $0x28] sm:$0xff] }
  0xd3   : > { %v1626_v49 = vpack.c.b16 %v495_v38, %v495_v38  ;;  %1424 = vmatpush.bf16.msra.mxu3 %v1409_v15  ;;  %942 = vmatpush.bf16.msra.mxu0 %v1409_v15 }
  0xd4   : > { %v758_v28 = vsel %vm752_vm8, %v756_v16, %v757_v21  ;;  %v628_v30 = vsel %vm622_vm7, %v626_v23, %v627_v24  ;;  %v532_v31 = vrot.slane %v530_v25, 1  ;;  %v678_v35 = vrot.slane %v676_v27, 1 }
  0xd5   : > { %1363 = vmatmul.msk.bf16.gmra.mxu1 %vm777_vm9, %v758_v28  ;;  %649 = vrot.lane.b32.xlu0 %v628_v30, %s1473_s25  ;;  %v679_v36 = vrot.slane %v530_v25, 2  ;;  %v760_v57 = vrot.slane %v1626_v49, 2  ;;  %v542_v61 = vshll.u32 %v1626_v49, 16  ;;  %v685_v1 = vshrl.u32 %v1626_v49, 16 }
  0xd6   : > { %v533_v33 = vsel %vm509_vm11, %v528_v26, %v532_v31  ;;  %v585_v21 = vshll.u32 %v1648_v9, 16  ;;  %v1408_v26 = vld [vmem:[%s1834_s1 + $0x20] sm:$0xff]  ;;  %v583_v30 = vshrl.u32 %v1648_v9, 16 }
  0xd7   : > { %608 = vrot.lane.b32.xlu1 %v533_v33, %s1474_s26  ;;  %v680_v43 = vor.u32 %v679_v36, %v678_v35  ;;  %v544_v5 = vrot.slane %v542_v61, 1  ;;  %v687_v10 = vrot.slane %v685_v1, 1  ;;  %v688_v14 = vrot.slane %v542_v61, 2  ;;  %1425 = vmatpush.bf16.msra.mxu3 %v1408_v26  ;;  %v1407_v35 = vld [vmem:[%s1834_s1 + $0x18] sm:$0xff] }
  0xd8   : > { %v587_v31 = vrot.slane %v585_v21, 1  ;;  %943 = vmatpush.bf16.msra.mxu0 %v1408_v26  ;;  %v771_v36 = vrot.slane %v1648_v9, 2  ;;  %v719_v58 = vrot.slane %v585_v21, 2  ;;  %v630_v61 = vrot.slane %v1626_v49, 1 }
  0xd9   : > { %v241_v41 = vpop.permute.xlu1 %240  ;;  %v681_v53 = vsel %vm663_vm12, %v675_v22, %v680_v43  ;;  %v689_v25 = vor.u32 %v688_v14, %v687_v10  ;;  %v432_v49 = vpack.c.bf16 %v1309_v62, %v1309_v62 }
  0xda   : > { %vm355_vm5 = vcmp.eq.s32.totalorder %v241_v41, %v1525_v17  ;;  %v588_v43 = vor.u32 %v587_v31, %v583_v30 }
  0xdb   : > { %v1304_v45 = vsel %vm355_vm5, 1.0, %v1472_v19  ;;  %v1639_v0 = vpop.permute.xlu2 %259  ;;  %1426 = vmatpush.bf16.msra.mxu3 %v1407_v35  ;;  %v496_v15 = vunpack.c.l.b16 %v432_v49  ;;  %vm1172_vm5 = vcmask 1047559  }
  0xdc   : > { %v427_v50 = vpack.c.bf16 %v1304_v45, %v1304_v45  ;;  %944 = vmatpush.bf16.msra.mxu0 %v1407_v35  ;;  %vm358_vm0 = vcmp.eq.s32.totalorder %v1639_v0, %v1525_v17 }
  0xdd   : > { %v1307_v14 = vsel %vm358_vm0, 1.0, %v1472_v19  ;;  %v504_v26 = vpack.c.b16 %v496_v15, %v496_v15 }
  0xde   : > { %v465_v52 = vunpack.c.l.b16 %v427_v50 }
  0xdf   : > { %738 = vrot.lane.b32.xlu1 %v681_v53, %s1475_s27  ;;  %v633_v42 = vrot.slane %v504_v26, 1 }
  0xe0   : > { %v1630_v56 = vpack.c.b16 %v466_v51, %v465_v52  ;;  %v1406_v51 = vld [vmem:[%s1834_s1 + $0x10] sm:$0xff] }
  0xe1   : > { %1427 = vmatpush.bf16.msra.mxu3 %v1406_v51  ;;  %945 = vmatpush.bf16.msra.mxu0 %v1406_v51 }
  0xe2   : > { %v759_v59 = vrot.slane %v1630_v56, 2  ;;  %v537_v60 = vshll.u32 %v1630_v56, 16  ;;  %v535_v3 = vshrl.u32 %v1630_v56, 16 }
  0xe4   : > { %v761_v2 = vsel %vm752_vm8, %v759_v59, %v760_v57  ;;  %v539_v4 = vrot.slane %v537_v60, 1  ;;  %v682_v12 = vrot.slane %v535_v3, 1  ;;  %v683_v13 = vrot.slane %v537_v60, 2 }
  0xe5   : > { %1364 = vmatmul.msk.bf16.gmra.mxu1 %vm777_vm9, %v761_v2  ;;  %v718_v57 = vrot.slane %v583_v30, 1  ;;  %v629_v60 = vrot.slane %v1630_v56, 1  ;;  %v442_v2 = vpack.c.bf16 %v1319_v55, %v1319_v55  ;;  %1428 = vmatpush.bf16.msra.mxu3 %v1405_v63  ;;  %v694_v55 = vshrl.u32 %v504_v26, 16 }
  0xe6   : > { %v540_v6 = vor.u32 %v539_v4, %v535_v3  ;;  %v684_v24 = vor.u32 %v683_v13, %v682_v12  ;;  %946 = vmatpush.bf16.msra.mxu0 %v1405_v63 }
  0xe7   : > { %v631_v10 = vsel %vm622_vm7, %v629_v60, %v630_v61  ;;  %v475_v12 = vunpack.c.l.b16 %v442_v2 }
  0xe8   : > { %v545_v11 = vsel %vm509_vm11, %v540_v6, %v544_v5  ;;  %v690_v33 = vsel %vm663_vm12, %v684_v24, %v689_v25  ;;  %v720_v5 = vor.u32 %v719_v58, %v718_v57 }
  0xe9   : > { %610 = vrot.lane.b32.xlu1 %v545_v11, %s1474_s26  ;;  %v329_v16 = vpop.permute.xlu1 %328  ;;  %v1404_v11 = vld [vmem:[%s1834_s1] sm:$0xff] }
  0xea   : > { %vm369_vm6 = vcmp.eq.s32.totalorder %v329_v16, %v1525_v17  ;;  %1429 = vmatpush.bf16.msra.mxu3 %v1404_v11  ;;  %947 = vmatpush.bf16.msra.mxu0 %v1404_v11 }
  0xeb   : > { %v1318_v20 = vsel %vm369_vm6, 1.0, %v1472_v19  ;;  %v348_v27 = vpop.permute.xlu2 %347 }
  0xec   : > { %v441_v23 = vpack.c.bf16 %v1318_v20, %v1318_v20  ;;  %vm372_vm10 = vcmp.eq.s32.totalorder %v348_v27, %v1525_v17 }
  0xed   : > { %v1321_v37 = vsel %vm372_vm10, 1.0, %v1472_v19 }
  0xee   : > { %v499_v28 = vunpack.c.l.b16 %v441_v23  ;;  %v444_v50 = vpack.c.bf16 %v1321_v37, %v1321_v37  ;;  %v430_v23 = vpack.c.bf16 %v1307_v14, %v1307_v14 }
  0xf0   : > { %v507_v32 = vpack.c.b16 %v499_v28, %v499_v28  ;;  %v500_v59 = vunpack.c.l.b16 %v444_v50 }
  0xf1   : > { %740 = vrot.lane.b32.xlu1 %v690_v33, %s1475_s27 }
  0xf2   : > { %v772_v38 = vrot.slane %v507_v32, 2  ;;  %v642_v40 = vrot.slane %v507_v32, 1  ;;  %v590_v41 = vshll.u32 %v507_v32, 16  ;;  %v721_v44 = vshrl.u32 %v507_v32, 16 }
  0xf3   : > { %v508_v6 = vpack.c.b16 %v500_v59, %v500_v59 }
  0xf4   : > { %v773_v45 = vsel %vm752_vm8, %v771_v36, %v772_v38  ;;  %v643_v46 = vsel %vm622_vm7, %v641_v39, %v642_v40  ;;  %v592_v22 = vrot.slane %v590_v41, 1  ;;  %v723_v53 = vrot.slane %v721_v44, 1 }
  0xf5   : > { %1368 = vmatmul.msk.bf16.gmra.mxu2 %vm777_vm9, %v773_v45  ;;  %659 = vrot.lane.b32.xlu0 %v643_v46, %s1473_s25  ;;  %v724_v54 = vrot.slane %v590_v41, 2  ;;  %v775_v18 = vrot.slane %v508_v6, 2  ;;  %v645_v20 = vrot.slane %v508_v6, 1  ;;  %v602_v30 = vshll.u32 %v508_v6, 16 }
  0xf6   : > { %v593_v52 = vsel %vm509_vm11, %v588_v43, %v592_v22  ;;  %v730_v37 = vshrl.u32 %v508_v6, 16  ;;  %v467_v38 = vunpack.c.l.b16 %v430_v23  ;;  %v763_v40 = vrot.slane %v504_v26, 2 }
  0xf7   : > { %618 = vrot.lane.b32.xlu2 %v593_v52, %s1474_s26  ;;  %v725_v3 = vor.u32 %v724_v54, %v723_v53  ;;  %v604_v36 = vrot.slane %v602_v30, 1  ;;  %v733_v43 = vrot.slane %v602_v30, 2  ;;  %v554_v44 = vshll.u32 %v504_v26, 16 }
  0xf8   : > { %v732_v22 = vrot.slane %v730_v37, 1 }
  0xf9   : > { %v342_v1 = vpop.permute.xlu1 %341  ;;  %v726_v0 = vsel %vm663_vm12, %v720_v5, %v725_v3  ;;  %v556_v54 = vrot.slane %v554_v44, 1  ;;  %v697_v5 = vrot.slane %v554_v44, 2 }
  0xfa   : > { %vm371_vm15 = vcmp.eq.s32.totalorder %v342_v1, %v1525_v17  ;;  %v734_v62 = vor.u32 %v733_v43, %v732_v22  ;;  %v696_v1 = vrot.slane %v694_v55, 1 }
  0xfb   : > { %v1320_v4 = vsel %vm371_vm15, 1.0, %v1472_v19 }
  0xfc   : > { %v443_v8 = vpack.c.bf16 %v1320_v4, %v1320_v4 }
  0xfd   : > { %651 = vrot.lane.b32.xlu0 %v631_v10, %s1473_s25  ;;  %v698_v10 = vor.u32 %v697_v5, %v696_v1 }
  0xfe   : > { %v476_v13 = vunpack.c.l.b16 %v443_v8 }
  0xff   : > { %748 = vrot.lane.b32.xlu2 %v726_v0, %s1475_s27  ;;  %v656_v6 = vpop.permute.xlu2 %655 }
 0x100   : > { %v1703_v16 = vpack.c.b16 %v476_v13, %v475_v12  ;;  %v765_v12 = vrot.slane %v1546_v47, 2  ;;  %v766_v13 = vrot.slane %v1537_v34, 2 }
 0x101   : > { %v266_v21 = vpop.permute.xlu1 %265 }
 0x102   : > { %vm359_vm1 = vcmp.eq.s32.totalorder %v266_v21, %v1525_v17  ;;  %v774_v24 = vrot.slane %v1703_v16, 2  ;;  %v644_v25 = vrot.slane %v1703_v16, 1  ;;  %v597_v28 = vshll.u32 %v1703_v16, 16 }
 0x103   : > { %v1308_v27 = vsel %vm359_vm1, 1.0, %v1472_v19  ;;  %v595_v17 = vshrl.u32 %v1703_v16, 16  ;;  %v767_v15 = vsel %vm752_vm8, %v765_v12, %v766_v13 }
 0x104   : > { %v431_v31 = vpack.c.bf16 %v1308_v27, %v1308_v27  ;;  %v776_v32 = vsel %vm752_vm8, %v774_v24, %v775_v18  ;;  %v646_v33 = vsel %vm622_vm7, %v644_v25, %v645_v20  ;;  %v599_v35 = vrot.slane %v597_v28, 1 }
 0x105   : > { %1369 = vmatmul.msk.bf16.gmra.mxu2 %vm777_vm9, %v776_v32  ;;  %661 = vrot.lane.b32.xlu0 %v646_v33, %s1473_s25  ;;  %v727_v46 = vrot.slane %v595_v17, 1  ;;  %v728_v50 = vrot.slane %v597_v28, 2 }
 0x106   : > { %v468_v39 = vunpack.c.l.b16 %v431_v31  ;;  %v600_v19 = vor.u32 %v599_v35, %v595_v17 }
 0x107   : > { %v729_v61 = vor.u32 %v728_v50, %v727_v46  ;;  %v745_v0 = vpop.permute.xlu2 %744 }
 0x108   : > { %v1715_v41 = vpack.c.b16 %v468_v39, %v467_v38  ;;  %v605_v45 = vsel %vm509_vm11, %v600_v19, %v604_v36 }
 0x109   : > { %620 = vrot.lane.b32.xlu2 %v605_v45, %s1474_s26  ;;  %v735_v49 = vsel %vm663_vm12, %v729_v61, %v734_v62 }
 0x10a   : > { %v762_v51 = vrot.slane %v1715_v41, 2  ;;  %v632_v52 = vrot.slane %v1715_v41, 1  ;;  %v549_v53 = vshll.u32 %v1715_v41, 16  ;;  %v547_v59 = vshrl.u32 %v1715_v41, 16 }
 0x10c   : > { %v764_v57 = vsel %vm752_vm8, %v762_v51, %v763_v40  ;;  %v634_v58 = vsel %vm622_vm7, %v632_v52, %v633_v42  ;;  %v551_v60 = vrot.slane %v549_v53, 1  ;;  %v691_v3 = vrot.slane %v547_v59, 1 }
 0x10d   : > { %1365 = vmatmul.msk.bf16.gmra.mxu1 %vm777_vm9, %v764_v57  ;;  %653 = vrot.lane.b32.xlu0 %v634_v58, %s1473_s25  ;;  %v692_v4 = vrot.slane %v549_v53, 2  ;;  %vm794_vm7 = vcmask 523264   ;;  %vm1160_vm8 = vcmask 1041409  }
 0x10e   : > { %v552_v63 = vor.u32 %v551_v60, %v547_v59 }
 0x10f   : > { %v693_v8 = vor.u32 %v692_v4, %v691_v3 }
 0x110   : > { %v557_v2 = vsel %vm509_vm11, %v552_v63, %v556_v54  ;;  %vm811_vm11 = vcmask 785408  }
 0x111   : > { %612 = vrot.lane.b32.xlu1 %v557_v2, %s1474_s26  ;;  %750 = vrot.lane.b32.xlu2 %v735_v49, %s1475_s27  ;;  %v699_v11 = vsel %vm663_vm12, %v693_v8, %v698_v10  ;;  %vm1164_vm12 = vcmask 1043459  }
 0x113   : > { %v617_v24 = vpop.permute.xlu2 %616 }
 0x114   : > { %v789_v27 = vsel %vm777_vm9, %v1579_v29, %v617_v24 }
 0x118   : > { %v648_v23 = vpop.permute.xlu0 %647 }
 0x119   : > { %742 = vrot.lane.b32.xlu1 %v699_v11, %s1475_s27 }
 0x11b   : > { %v747_v32 = vpop.permute.xlu2 %746 }
 0x11c   : > { %v615_v14 = vpop.permute.xlu1 %614 }
 0x11d   : > { %v787_v18 = vsel %vm777_vm9, %v1546_v47, %v615_v14  ;;  %1366 = vmatmul.msk.bf16.gmra.mxu1 %vm777_vm9, %v767_v15 }
 0x11e   : > { %v804_v20 = vsel %vm794_vm7, %v787_v18, %v656_v6 }
 0x11f   : > { %v825_v21 = vsel %vm811_vm11, %v804_v20, %v745_v0  ;;  %v1421_v20 = vld [vmem:[%s1836_s3 + $0x38] sm:$0xff] }
 0x120   : > { %968 = vmatmul.bf16.vlgmr.msra.gmra.mxu3 %v825_v21  ;;  %1224 = vmatpush.bf16.msrb.mxu2 %v1421_v20 }
 0x122   : > { %v998_v62 = vpop.f32.mrf.mxu1 }
 0x124   : > { %v607_v25 = vpop.permute.xlu1 %606 }
 0x125   : > { %v779_v34 = vsel %vm777_vm9, %v1548_v48, %v607_v25  ;;  %v1420_v25 = vld [vmem:[%s1836_s3 + $0x30] sm:$0xff] }
 0x126   : > { %v796_v30 = vsel %vm794_vm7, %v779_v34, %v648_v23  ;;  %1225 = vmatpush.bf16.msrb.mxu2 %v1420_v25 }
 0x127   : > { %v658_v26 = vpop.permute.xlu0 %657 }
 0x128   : > { %v806_v28 = vsel %vm794_vm7, %v789_v27, %v658_v26  ;;  %v1419_v26 = vld [vmem:[%s1836_s3 + $0x28] sm:$0xff] }
 0x129   : > { %v828_v33 = vsel %vm811_vm11, %v806_v28, %v747_v32 }
 0x12a   : > { %1226 = vmatpush.bf16.msrb.mxu2 %v1419_v26 }
 0x12c   : > { %v737_v47 = vpop.permute.xlu1 %736 }
 0x12d   : > { %v813_v31 = vsel %vm811_vm11, %v796_v30, %v737_v47 }
 0x12e   : > { %948 = vmatmul.bf16.vlgmr.msra.gmra.mxu0 %v813_v31 }
 0x130   : > { %973 = vmatmul.bf16.gmra.mxu3 %v828_v33  ;;  %v1785_v33 = vld [vmem:[%s1835_s2 + $0x8] sm:$0xff] }
 0x138   : > { %v1023_v49 = vpop.f32.mrf.mxu2 }
 0x140   : > { %v1025_v11 = vpop.f32.mrf.mxu2 }
 0x147   : > { %v650_v35 = vpop.permute.xlu0 %649 }
 0x149   : > { %v609_v17 = vpop.permute.xlu1 %608 }
 0x14a   : > { %v781_v48 = vsel %vm777_vm9, %v1601_v7, %v609_v17 }
 0x14b   : > { %v798_v29 = vsel %vm794_vm7, %v781_v48, %v650_v35 }
 0x151   : > { %v739_v36 = vpop.permute.xlu1 %738  ;;  %v619_v38 = vpop.permute.xlu2 %618 }
 0x152   : > { %v816_v37 = vsel %vm811_vm11, %v798_v29, %v739_v36  ;;  %v791_v40 = vsel %vm777_vm9, %v1648_v9, %v619_v38 }
 0x153   : > { %953 = vmatmul.bf16.gmra.mxu0 %v816_v37  ;;  %v1791_v37 = vld [vmem:[%s1835_s2] sm:$0xff] }
 0x159   : > { %v749_v39 = vpop.permute.xlu2 %748 }
 0x15b   : > { %v611_v19 = vpop.permute.xlu1 %610 }
 0x15c   : > { %v783_v45 = vsel %vm777_vm9, %v1630_v56, %v611_v19 }
 0x163   : > { %v621_v7 = vpop.permute.xlu2 %620  ;;  %v741_v50 = vpop.permute.xlu1 %740 }
 0x164   : > { %v793_v9 = vsel %vm777_vm9, %v1703_v16, %v621_v7  ;;  %v1000_v16 = vpop.f32.mrf.mxu1 }
 0x167   : > { %v660_v42 = vpop.permute.xlu0 %659 }
 0x168   : > { %v808_v43 = vsel %vm794_vm7, %v791_v40, %v660_v42 }
 0x169   : > { %v831_v44 = vsel %vm811_vm11, %v808_v43, %v749_v39 }
 0x16a   : > { %978 = vmatmul.bf16.gmra.mxu3 %v831_v44 }
 0x16b   : > { %v751_v53 = vpop.permute.xlu2 %750 }
 0x16c   : > { %v1003_v63 = vpop.f32.mrf.mxu1 }
 0x16f   : > { %v652_v46 = vpop.permute.xlu0 %651 }
 0x170   : > { %v800_v22 = vsel %vm794_vm7, %v783_v45, %v652_v46 }
 0x171   : > { %v819_v51 = vsel %vm811_vm11, %v800_v22, %v741_v50 }
 0x172   : > { %958 = vmatmul.bf16.gmra.mxu0 %v819_v51 }
 0x174   : > { %v1005_v1 = vpop.f32.mrf.mxu1 }
 0x177   : > { %v662_v52 = vpop.permute.xlu0 %661 }
 0x178   : > { %v810_v54 = vsel %vm794_vm7, %v793_v9, %v662_v52  ;;  %v1028_v0 = vpop.f32.mrf.mxu2 }
 0x179   : > { %v834_v55 = vsel %vm811_vm11, %v810_v54, %v751_v53 }
 0x17a   : > { %983 = vmatmul.bf16.gmra.mxu3 %v834_v55 }
 0x17c   : > { %v1008_v4 = vpop.f32.mrf.mxu1 }
 0x17f   : > { %v654_v58 = vpop.permute.xlu0 %653 }
 0x180   : > { %v1030_v23 = vpop.f32.mrf.mxu2 }
 0x183   : > { %v613_v57 = vpop.permute.xlu1 %612 }
 0x184   : > { %v785_v56 = vsel %vm777_vm9, %v1715_v41, %v613_v57  ;;  %v1010_v8 = vpop.f32.mrf.mxu1  ;;  %vm1162_vm9 = vcmask 1042434  }
 0x185   : > { %v802_v60 = vsel %vm794_vm7, %v785_v56, %v654_v58  ;;  %v1418_v56 = vld [vmem:[%s1836_s3 + $0x20] sm:$0xff] }
 0x186   : > { %1227 = vmatpush.bf16.msrb.mxu2 %v1418_v56 }
 0x188   : > { %v1033_v30 = vpop.f32.mrf.mxu2 }
 0x18b   : > { %v743_v59 = vpop.permute.xlu1 %742 }
 0x18c   : > { %v822_v61 = vsel %vm811_vm11, %v802_v60, %v743_v59  ;;  %v1769_v12 = vpop.f32.mrf.mxu1 }
 0x18d   : > { %963 = vmatmul.bf16.gmra.mxu0 %v822_v61 }
 0x190   : > { %v1035_v58 = vpop.f32.mrf.mxu2 }
 0x194   : > { %v1771_v15 = vpop.f32.mrf.mxu1 }
 0x19c   : > { %v1018_v24 = vpop.f32.mrf.mxu1 }
 0x1a3   : > { %v969_v2 = vpop.f32.mrf.mxu3 }
 0x1a4   : > { %v1020_v48 = vpop.f32.mrf.mxu1  ;;  %v1019_v43 = vadd.f32 %v1018_v24, %v969_v2 }
 0x1a6   : > { %v1048_v54 = vadd.f32 %v1791_v37, %v1019_v43 }
 0x1ab   : > { %v949_v3 = vpop.f32.mrf.mxu0  ;;  %v971_v5 = vpop.f32.mrf.mxu3 }
 0x1ac   : > { %v999_v35 = vadd.f32 %v998_v62, %v949_v3  ;;  %v1021_v38 = vadd.f32 %v1020_v48, %v971_v5 }
 0x1ae   : > { %v1040_v45 = vadd.f32 %v1791_v37, %v999_v35  ;;  %v1049_v22 = vadd.f32 %v1785_v33, %v1021_v38  ;;  %v1414_v35 = vld [vmem:[%s1836_s3] sm:$0xff] }
 0x1b0   : > { %v1084_v62 = vmax.f32 %v1048_v54, %v1049_v22 }
 0x1b3   : > { %v951_v6 = vpop.f32.mrf.mxu0  ;;  %v974_v10 = vpop.f32.mrf.mxu3 }
 0x1b4   : > { %v1001_v31 = vadd.f32 %v1000_v16, %v951_v6  ;;  %v1024_v46 = vadd.f32 %v1023_v49, %v974_v10  ;;  %v1417_v6 = vld [vmem:[%s1836_s3 + $0x18] sm:$0xff]  ;;  %v1085_v10 = vrot.slane %v1084_v62, 4 }
 0x1b5   : > { %1228 = vmatpush.bf16.msrb.mxu2 %v1417_v6 }
 0x1b6   : > { %v1041_v19 = vadd.f32 %v1785_v33, %v1001_v31  ;;  %v1050_v59 = vadd.f32 %v1791_v37, %v1024_v46  ;;  %v1086_v24 = vmax.f32 %v1084_v62, %v1085_v10 }
 0x1b8   : > { %v1056_v52 = vmax.f32 %v1040_v45, %v1041_v19 }
 0x1ba   : > { %v1057_v2 = vrot.slane %v1056_v52, 4 }
 0x1bb   : > { %v976_v13 = vpop.f32.mrf.mxu3 }
 0x1bc   : > { %v1026_v40 = vadd.f32 %v1025_v11, %v976_v13 }
 0x1be   : > { %v1051_v53 = vadd.f32 %v1785_v33, %v1026_v40 }
 0x1c0   : > { %v1091_v3 = vmax.f32 %v1050_v59, %v1051_v53 }
 0x1d0   : > { %v954_v41 = vpop.f32.mrf.mxu0 }
 0x1d1   : > { %v1004_v32 = vadd.f32 %v1003_v63, %v954_v41 }
 0x1d3   : > { %v1042_v42 = vadd.f32 %v1791_v37, %v1004_v32  ;;  %v1087_v32 = vrot.slane %v1086_v24, 2 }
 0x1d8   : > { %v956_v14 = vpop.f32.mrf.mxu0 }
 0x1d9   : > { %v1006_v28 = vadd.f32 %v1005_v1, %v956_v14  ;;  %v1058_v14 = vmax.f32 %v1056_v52, %v1057_v2 }
 0x1db   : > { %v1043_v36 = vadd.f32 %v1785_v33, %v1006_v28  ;;  %v1059_v26 = vrot.slane %v1058_v14, 2 }
 0x1dd   : > { %v1063_v50 = vmax.f32 %v1042_v42, %v1043_v36  ;;  %v1060_v36 = vmax.f32 %v1058_v14, %v1059_v26 }
 0x1df   : > { %v1064_v60 = vrot.slane %v1063_v50, 4 }
 0x1ed   : > { %v979_v18 = vpop.f32.mrf.mxu3 }
 0x1ee   : > { %v1029_v51 = vadd.f32 %v1028_v0, %v979_v18  ;;  %v1416_v0 = vld [vmem:[%s1836_s3 + $0x10] sm:$0xff]  ;;  %v1092_v18 = vrot.slane %v1091_v3, 4 }
 0x1ef   : > { %v959_v21 = vpop.f32.mrf.mxu0  ;;  %1229 = vmatpush.bf16.msrb.mxu2 %v1416_v0 }
 0x1f0   : > { %v1009_v17 = vadd.f32 %v1008_v4, %v959_v21  ;;  %v1052_v16 = vadd.f32 %v1791_v37, %v1029_v51 }
 0x1f2   : > { %v1044_v44 = vadd.f32 %v1791_v37, %v1009_v17 }
 0x1f5   : > { %v981_v34 = vpop.f32.mrf.mxu3 }
 0x1f6   : > { %v1031_v7 = vadd.f32 %v1030_v23, %v981_v34  ;;  %v1415_v34 = vld [vmem:[%s1836_s3 + $0x8] sm:$0xff] }
 0x1f7   : > { %v961_v27 = vpop.f32.mrf.mxu0  ;;  %1230 = vmatpush.bf16.msrb.mxu2 %v1415_v34 }
 0x1f8   : > { %v1011_v47 = vadd.f32 %v1010_v8, %v961_v27  ;;  %v1053_v55 = vadd.f32 %v1785_v33, %v1031_v7  ;;  %v1065_v8 = vmax.f32 %v1063_v50, %v1064_v60  ;;  %v1093_v27 = vmax.f32 %v1091_v3, %v1092_v18 }
 0x1f9   : > { %v1061_v7 = vrot.slane %v1060_v36, 1 }
 0x1fa   : > { %v1045_v39 = vadd.f32 %v1785_v33, %v1011_v47  ;;  %v1098_v4 = vmax.f32 %v1052_v16, %v1053_v55  ;;  %v1066_v21 = vrot.slane %v1065_v8, 2 }
 0x1fb   : > { %1231 = vmatpush.bf16.msrb.mxu2 %v1414_v35 }
 0x1fc   : > { %v1070_v9 = vmax.f32 %v1044_v44, %v1045_v39  ;;  %v1099_v20 = vrot.slane %v1098_v4, 4  ;;  %v1067_v47 = vmax.f32 %v1065_v8, %v1066_v21 }
 0x1fd   : > { %v984_v29 = vpop.f32.mrf.mxu3 }
 0x1fe   : > { %v1034_v57 = vadd.f32 %v1033_v30, %v984_v29  ;;  %v1071_v63 = vrot.slane %v1070_v9, 4  ;;  %v1100_v28 = vmax.f32 %v1098_v4, %v1099_v20  ;;  %v1094_v29 = vrot.slane %v1093_v27, 2 }
 0x1ff   : > { %v1068_v19 = vrot.slane %v1067_v47, 1 }
 0x200   : > { %v1054_v5 = vadd.f32 %v1791_v37, %v1034_v57  ;;  %v1072_v41 = vmax.f32 %v1070_v9, %v1071_v63  ;;  %v1101_v39 = vrot.slane %v1100_v28, 2  ;;  %v1095_v45 = vmax.f32 %v1093_v27, %v1094_v29 }
 0x201   : > { %v1069_v22 = vmax.f32 %v1067_v47, %v1068_v19 }
 0x202   : > { %v1073_v25 = vrot.slane %v1072_v41, 2  ;;  %v1102_v50 = vmax.f32 %v1100_v28, %v1101_v39  ;;  %v1096_v54 = vrot.slane %v1095_v45, 1 }
 0x203   : > { %v1113_v56 = vmax.f32 %v1069_v22, 0.0 }
 0x204   : > { %v1074_v17 = vmax.f32 %v1072_v41, %v1073_v25  ;;  %v1103_v57 = vrot.slane %v1102_v50, 1 }
 0x205   : > { %v986_v61 = vpop.f32.mrf.mxu3  ;;  %v1121_v63 = vpack.c.bf16 %v1113_v56, %v1113_v56 }
 0x206   : > { %v1036_v1 = vadd.f32 %v1035_v58, %v986_v61  ;;  %v1075_v44 = vrot.slane %v1074_v17, 1  ;;  %v1097_v61 = vmax.f32 %v1095_v45, %v1096_v54  ;;  %v1104_v16 = vmax.f32 %v1102_v50, %v1103_v57 }
 0x207   : > { %v1153_v10 = vunpack.c.l.b16 %v1121_v63 }
 0x208   : > { %v1055_v49 = vadd.f32 %v1785_v33, %v1036_v1  ;;  %v1076_v53 = vmax.f32 %v1074_v17, %v1075_v44  ;;  %v1118_v8 = vmax.f32 %v1104_v16, 0.0 }
 0x20a   : > { %v1105_v11 = vmax.f32 %v1054_v5, %v1055_v49  ;;  %v964_v13 = vpop.f32.mrf.mxu0  ;;  %v1114_v59 = vmax.f32 %v1076_v53, 0.0  ;;  %v1117_v49 = vmax.f32 %v1097_v61, 0.0  ;;  %v1126_v21 = vpack.c.bf16 %v1118_v8, %v1118_v8 }
 0x20b   : > { %v1014_v31 = vadd.f32 %v1769_v12, %v964_v13  ;;  %v1088_v12 = vmax.f32 %v1086_v24, %v1087_v32 }
 0x20c   : > { %v1106_v23 = vrot.slane %v1105_v11, 4  ;;  %v1122_v4 = vpack.c.bf16 %v1114_v59, %v1114_v59  ;;  %v1125_v18 = vpack.c.bf16 %v1117_v49, %v1117_v49  ;;  %v1158_v47 = vunpack.c.l.b16 %v1126_v21 }
 0x20d   : > { %v1046_v42 = vadd.f32 %v1791_v37, %v1014_v31  ;;  %v1089_v52 = vrot.slane %v1088_v12, 1 }
 0x20e   : > { %v1107_v30 = vmax.f32 %v1105_v11, %v1106_v23  ;;  %v1154_v0 = vunpack.c.l.b16 %v1122_v4  ;;  %v1157_v27 = vunpack.c.l.b16 %v1125_v18 }
 0x210   : > { %v1108_v40 = vrot.slane %v1107_v30, 2 }
 0x212   : > { %v966_v48 = vpop.f32.mrf.mxu0  ;;  %v1109_v51 = vmax.f32 %v1107_v30, %v1108_v40 }
 0x213   : > { %v1016_v38 = vadd.f32 %v1771_v15, %v966_v48  ;;  %v1062_v15 = vmax.f32 %v1060_v36, %v1061_v7 }
 0x214   : > { %v1110_v37 = vrot.slane %v1109_v51, 1 }
 0x215   : > { %v1047_v43 = vadd.f32 %v1785_v33, %v1016_v38  ;;  %v1090_v33 = vmax.f32 %v1088_v12, %v1089_v52  ;;  %v1112_v60 = vmax.f32 %v1062_v15, 0.0 }
 0x216   : > { %v1111_v2 = vmax.f32 %v1109_v51, %v1110_v37 }
 0x217   : > { %v1077_v46 = vmax.f32 %v1046_v42, %v1047_v43  ;;  %v1116_v3 = vmax.f32 %v1090_v33, 0.0  ;;  %v1120_v5 = vpack.c.bf16 %v1112_v60, %v1112_v60 }
 0x218   : > { %v1119_v11 = vmax.f32 %v1111_v2, 0.0 }
 0x219   : > { %v1078_v9 = vrot.slane %v1077_v46, 4  ;;  %v1124_v13 = vpack.c.bf16 %v1116_v3, %v1116_v3  ;;  %v1152_v14 = vunpack.c.l.b16 %v1120_v5 }
 0x21a   : > { %v1127_v25 = vpack.c.bf16 %v1119_v11, %v1119_v11 }
 0x21b   : > { %v1079_v55 = vmax.f32 %v1077_v46, %v1078_v9  ;;  %v1161_v23 = vsel %vm1160_vm8, %v1153_v10, %v1152_v14  ;;  %v1156_v34 = vunpack.c.l.b16 %v1124_v13 }
 0x21c   : > { %v1163_v26 = vsel %vm1162_vm9, %v1154_v0, %v1161_v23  ;;  %v1159_v31 = vunpack.c.l.b16 %v1127_v25 }
 0x21d   : > { %v1080_v58 = vrot.slane %v1079_v55, 2 }
 0x21f   : > { %v1081_v62 = vmax.f32 %v1079_v55, %v1080_v58 }
 0x221   : > { %v1082_v1 = vrot.slane %v1081_v62, 1 }
 0x223   : > { %v1083_v6 = vmax.f32 %v1081_v62, %v1082_v1 }
 0x225   : > { %v1115_v41 = vmax.f32 %v1083_v6, 0.0 }
 0x227   : > { %v1123_v20 = vpack.c.bf16 %v1115_v41, %v1115_v41 }
 0x229   : > { %v1155_v24 = vunpack.c.l.b16 %v1123_v20 }
 0x22b   : > { %v1165_v28 = vsel %vm1164_vm12, %v1155_v24, %v1163_v26 }
 0x22c   : > { %v1167_v30 = vsel %vm1166_vm2, %v1156_v34, %v1165_v28 }
 0x22d   : > { %v1169_v32 = vsel %vm1168_vm3, %v1157_v27, %v1167_v30 }
 0x22e   : > { %v1171_v17 = vsel %vm1170_vm4, %v1158_v47, %v1169_v32 }
 0x22f   : > { %v1173_v48 = vsel %vm1172_vm5, %v1159_v31, %v1171_v17 }
 0x230   : > { %v1174_v35 = vpack.c.b16 %v1173_v48, %v1173_v48 }
 0x232   : > { %1232 = vmatmul.bf16.vlgmr.msrb.gmra.mxu2 %v1174_v35 }
 0x2b5   : > { %v1233_v36 = vpop.f32.mrf.mxu2 }
 0x2b6   : > { %1237 = vst [vmem:[%s192_s20] sm:$0xff] %v1233_v36 }
 0x2bd   : > { %v1235_v29 = vpop.f32.mrf.mxu2 }
 0x2be PF: > { %s14_s15 = sadd.s32 1, %s1470_s15  }
 0x2bf   : > { %p11_p4 = scmp.ge.s32.totalorder %s14_s15, 4  }
 0x2c1   :  { %13 = sbr.rel (!%p11_p4) target bundleno = 1 (0x1), region = 66 }

</bundles_post_ra>
